<compile_context>
chip_gen: v5e
topology: v5e:2x2
jax: 0.10.0
libtpu: 0.0.40
codegen_flags: <defaults>
</compile_context>

<pallas_src>
import functools
import math

import jax
import jax.numpy as jnp
from jax.experimental import pallas as pl
from jax.experimental.pallas import tpu as pltpu


def _mha_kernel(x_ref, wqkv_ref, wo_ref, bo_ref, amask_ref, o_ref,
                bias_ref, acc_ref, *, scale):
    h = pl.program_id(1)

    # Once per batch row (h == 0): build the combined additive mask bias
    # (causal + key padding) and zero the output accumulator.
    @pl.when(h == 0)
    def _init():
        T = bias_ref.shape[0]
        row = jax.lax.broadcasted_iota(jnp.int32, (T, T), 0)
        col = jax.lax.broadcasted_iota(jnp.int32, (T, T), 1)
        keep = (col <= row) & (amask_ref[0] > 0.5)        # (T,T) & (1,T) -> (T,T)
        # NOTE: rows whose keys are all masked produce NaN after softmax, which
        # matches the PyTorch reference behaviour exactly.
        bias_ref[...] = jnp.where(keep, 0.0, -jnp.inf).astype(jnp.float32)
        acc_ref[...] = jnp.zeros_like(acc_ref)

    x = x_ref[0]                       # (T, d_in)  in compute dtype (bf16/f32)
    wq = wqkv_ref[0, 0]                # (d_in, Dh)  static index -> view
    wk = wqkv_ref[0, 1]
    wv = wqkv_ref[0, 2]
    wo = wo_ref[0]                     # (Dh, d_out_pad)

    # Per-head projections on the MXU (f32 accumulate); fold scale into q.
    q = (jnp.dot(x, wq, preferred_element_type=jnp.float32) * scale).astype(x.dtype)
    k = jnp.dot(x, wk, preferred_element_type=jnp.float32).astype(x.dtype)
    v = jnp.dot(x, wv, preferred_element_type=jnp.float32).astype(x.dtype)

    # Scores + one additive mask bias; softmax entirely in f32.
    s = jnp.dot(q, k.T, preferred_element_type=jnp.float32) + bias_ref[...]
    m = jnp.max(s, axis=-1, keepdims=True)
    p = jnp.exp(s - m)
    inv = pl.reciprocal(jnp.sum(p, axis=-1, keepdims=True), approx=True)
    w = (p * inv).astype(x.dtype)
    # TODO(synk): attention-weight dropout is identity in eval mode; training
    # dropout would use pltpu.prng_seed / pltpu.prng_random_bits here.

    ctx = jnp.dot(w, v, preferred_element_type=jnp.float32).astype(x.dtype)

    # Accumulate this head's contribution to the output projection:
    #   out = sum_h ctx_h @ Wo[h*Dh:(h+1)*Dh, :]   (replaces concat + big matmul)
    acc_ref[...] += jnp.dot(ctx, wo, preferred_element_type=jnp.float32)

    # Last head: add the output-projection bias and do one full-lane store.
    @pl.when(h == pl.num_programs(1) - 1)
    def _finalize():
        o_ref[0] = (acc_ref[...] + bo_ref[...]).astype(o_ref.dtype)


def multi_head_attention(x, wq_t, wk_t, wv_t, wo_t, bo, attention_mask,
                         num_heads, *, compute_dtype=jnp.bfloat16):
    """Causal multi-head attention forward (eval mode).

    x:              (B, T, d_in)
    wq_t/wk_t/wv_t: (d_in, d_out)  -- nn.Linear weights pre-transposed (y = x @ W_t)
    wo_t:           (d_out, d_out); bo: (d_out,)
    attention_mask: (B, T) float, 1 = keep, 0 = padding key.
    compute_dtype:  dtype fed to the MXU (bf16 recommended on v5e/v6e/v7x);
                    masking/softmax/accumulation stay f32; output keeps x.dtype.
    """
    B, T, d_in = x.shape
    d_out = wq_t.shape[1]
    assert d_out % num_heads == 0, "d_out must be divisible by num_heads"
    Dh = d_out // num_heads
    scale = 1.0 / math.sqrt(Dh)
    cdt = compute_dtype if compute_dtype is not None else x.dtype

    # Head-major weight layouts (done once, outside the hot path):
    #   Wqkv: (H, 3, d_in, Dh), Wo: (H, Dh, d_out) -> no lane slicing in-kernel.
    wq_h = wq_t.reshape(d_in, num_heads, Dh).transpose(1, 0, 2)
    wk_h = wk_t.reshape(d_in, num_heads, Dh).transpose(1, 0, 2)
    wv_h = wv_t.reshape(d_in, num_heads, Dh).transpose(1, 0, 2)
    wqkv_h = jnp.stack([wq_h, wk_h, wv_h], axis=1).astype(cdt)   # (H, 3, d_in, Dh)
    wo_h = wo_t.reshape(num_heads, Dh, d_out).astype(cdt)        # (H, Dh, d_out)

    # Pad the output feature dim to a multiple of 128 -> unmasked (full-lane)
    # output stores and MXU-aligned N for the output projection. Padding columns
    # are zero and sliced off after the call.
    d_pad = ((d_out + 127) // 128) * 128
    if d_pad != d_out:
        wo_h = jnp.pad(wo_h, ((0, 0), (0, 0), (0, d_pad - d_out)))
        bo = jnp.pad(bo, (0, d_pad - d_out))
    bo2 = bo.reshape(1, d_pad).astype(jnp.float32)
    amask3 = attention_mask.reshape(B, 1, T).astype(jnp.float32)
    x_c = x.astype(cdt)

    kernel = functools.partial(_mha_kernel, scale=scale)

    out = pl.pallas_call(
        kernel,
        out_shape=jax.ShapeDtypeStruct((B, T, d_pad), x.dtype),
        grid_spec=pltpu.PrefetchScalarGridSpec(
            num_scalar_prefetch=0,
            grid=(B, num_heads),                                        # batch x head
            in_specs=[
                pl.BlockSpec((1, T, d_in), lambda b, h: (b, 0, 0)),     # x (resident over h)
                pl.BlockSpec((1, 3, d_in, Dh), lambda b, h: (h, 0, 0, 0)),  # fused Wqkv[h]
                pl.BlockSpec((1, Dh, d_pad), lambda b, h: (h, 0, 0)),   # Wo[h]
                pl.BlockSpec((1, d_pad), lambda b, h: (0, 0)),          # bo (grid-invariant)
                pl.BlockSpec((1, 1, T), lambda b, h: (b, 0, 0)),        # mask row for batch b
            ],
            out_specs=pl.BlockSpec((1, T, d_pad), lambda b, h: (b, 0, 0)),
            scratch_shapes=[
                pltpu.VMEM((T, T), jnp.float32),       # combined mask bias (built at h==0)
                pltpu.VMEM((T, d_pad), jnp.float32),   # f32 output accumulator over heads
            ],
        ),
        compiler_params=pltpu.CompilerParams(
            dimension_semantics=("parallel", "arbitrary")),
    )(x_c, wqkv_h, wo_h, bo2, amask3)

    return out[..., :d_out] if d_pad != d_out else out


def _reference(x, wq_t, wk_t, wv_t, wo_t, bo, amask, num_heads):
    B, T, d_in = x.shape
    d_out = wq_t.shape[1]
    Dh = d_out // num_heads
    q = (x @ wq_t).reshape(B, T, num_heads, Dh).transpose(0, 2, 1, 3)
    k = (x @ wk_t).reshape(B, T, num_heads, Dh).transpose(0, 2, 1, 3)
    v = (x @ wv_t).reshape(B, T, num_heads, Dh).transpose(0, 2, 1, 3)
    s = jnp.einsum("bhqd,bhkd->bhqk", q, k)
    causal = jnp.triu(jnp.ones((T, T), bool), 1)
    s = jnp.where(causal[None, None], -jnp.inf, s)
    s = jnp.where((amask > 0.5)[:, None, None, :], s, -jnp.inf)
    w = jax.nn.softmax(s / math.sqrt(Dh), axis=-1)
    ctx = jnp.einsum("bhqk,bhkd->bhqd", w, v).transpose(0, 2, 1, 3)
    ctx = ctx.reshape(B, T, d_out)
    return ctx @ wo_t + bo


if __name__ == "__main__":
    B, T, d_in, d_out, num_heads = 2, 8, 32, 32, 4
    key = jax.random.PRNGKey(0)
    kx, kq, kk, kv, ko, kb = jax.random.split(key, 6)

    x = jax.random.normal(kx, (B, T, d_in), jnp.float32)
    # nn.Linear weights are (d_out, d_in); we store the transpose (d_in, d_out).
    wq_t = jax.random.normal(kq, (d_in, d_out), jnp.float32) * 0.1
    wk_t = jax.random.normal(kk, (d_in, d_out), jnp.float32) * 0.1
    wv_t = jax.random.normal(kv, (d_in, d_out), jnp.float32) * 0.1
    wo_t = jax.random.normal(ko, (d_out, d_out), jnp.float32) * 0.1
    bo = jax.random.normal(kb, (d_out,), jnp.float32) * 0.1

    # attention_mask: mark the last position of batch 1 as padding.
    amask = jnp.ones((B, T), jnp.float32).at[1, -1].set(0.0)

    ref = _reference(x, wq_t, wk_t, wv_t, wo_t, bo, amask, num_heads)

    # f32 MXU path (tight check; only approx-reciprocal deviates from reference).
    out_f32 = multi_head_attention(x, wq_t, wk_t, wv_t, wo_t, bo, amask,
                                   num_heads, compute_dtype=jnp.float32)
    out_f32 = jax.block_until_ready(out_f32)
    assert out_f32.shape == (B, T, d_out)
    assert jnp.allclose(out_f32, ref, atol=5e-3, rtol=5e-3)

    # bf16 MXU path (default; looser tolerance for bf16 operand rounding).
    out_bf16 = jax.block_until_ready(
        multi_head_attention(x, wq_t, wk_t, wv_t, wo_t, bo, amask, num_heads))
    assert out_bf16.shape == (B, T, d_out)
    assert jnp.allclose(out_bf16, ref, atol=2e-2, rtol=2e-2)

    print("KERNEL_OK")
</pallas_src>

<mosaic_0001>
module attributes {stable_mosaic.version = 11 : i64} {
  func.func @_mha_kernel(%arg0: i32, %arg1: i32, %arg2: memref<1x8x32xf32, #tpu.memory_space<vmem>>, %arg3: memref<1x3x32x8xf32, #tpu.memory_space<vmem>>, %arg4: memref<1x8x128xf32, #tpu.memory_space<vmem>>, %arg5: memref<1x128xf32, #tpu.memory_space<vmem>>, %arg6: memref<1x1x8xf32, #tpu.memory_space<vmem>>, %arg7: memref<1x8x128xf32, #tpu.memory_space<vmem>>, %arg8: memref<8x8xf32, #tpu.memory_space<vmem>>, %arg9: memref<8x128xf32, #tpu.memory_space<vmem>>) attributes {dimension_semantics = [#tpu.dimension_semantics<parallel>, #tpu.dimension_semantics<arbitrary>], iteration_bounds = array<i64: 2, 4>, scalar_prefetch = 0 : i64, scratch_operands = 2 : i64, tpu.core_type = #tpu.core_type<tc>, window_params = [{transform_indices = @transform_0, window_bounds = array<i64: 1, 8, 32>}, {transform_indices = @transform_1, window_bounds = array<i64: 1, 3, 32, 8>}, {transform_indices = @transform_2, window_bounds = array<i64: 1, 8, 128>}, {pipeline_mode = #tpu.pipeline_mode<synchronous>, transform_indices = @transform_3, window_bounds = array<i64: 1, 128>}, {transform_indices = @transform_4, window_bounds = array<i64: 1, 1, 8>}, {transform_indices = @transform_5, window_bounds = array<i64: 1, 8, 128>}]} {
    %c0_i32 = arith.constant 0 : i32
    %0 = arith.cmpi eq, %arg1, %c0_i32 : i32
    %1 = arith.extui %0 : i1 to i32
    %c0_i32_0 = arith.constant 0 : i32
    %2 = arith.cmpi ne, %1, %c0_i32_0 : i32
    scf.if %2 {
      %40 = tpu.iota {dimensions = array<i32: 0>} : vector<8x8xi32>
      %41 = tpu.iota {dimensions = array<i32: 1>} : vector<8x8xi32>
      %42 = arith.cmpi sle, %41, %40 : vector<8x8xi32>
      %c0_31 = arith.constant 0 : index
      %c0_32 = arith.constant 0 : index
      %c0_33 = arith.constant 0 : index
      %43 = vector.load %arg6[%c0_31, %c0_32, %c0_33] : memref<1x1x8xf32, #tpu.memory_space<vmem>>, vector<1x1x8xf32>
      %44 = vector.shape_cast %43 : vector<1x1x8xf32> to vector<1x8xf32>
      %cst_34 = arith.constant 5.000000e-01 : f32
      %45 = vector.broadcast %cst_34 : f32 to vector<1x8xf32>
      %46 = arith.cmpf ogt, %44, %45 : vector<1x8xf32>
      %47 = vector.broadcast %46 : vector<1x8xi1> to vector<8x8xi1>
      %48 = arith.andi %42, %47 : vector<8x8xi1>
      %cst_35 = arith.constant 0.000000e+00 : f32
      %cst_36 = arith.constant 0xFF800000 : f32
      %49 = vector.broadcast %cst_35 : f32 to vector<8x8xf32>
      %50 = vector.broadcast %cst_36 : f32 to vector<8x8xf32>
      %51 = arith.select %48, %49, %50 : vector<8x8xi1>, vector<8x8xf32>
      %c0_37 = arith.constant 0 : index
      %c0_38 = arith.constant 0 : index
      %52 = vector.load %arg8[%c0_37, %c0_38] : memref<8x8xf32, #tpu.memory_space<vmem>>, vector<8x8xf32>
      tpu.vector_store %arg8[%c0_37, %c0_38], %51 {strides = array<i32>} : memref<8x8xf32, #tpu.memory_space<vmem>>, vector<8x8xf32>,
      %cst_39 = arith.constant 0.000000e+00 : f32
      %53 = vector.broadcast %cst_39 : f32 to vector<8x128xf32>
      %c0_40 = arith.constant 0 : index
      %c0_41 = arith.constant 0 : index
      %54 = vector.load %arg9[%c0_40, %c0_41] : memref<8x128xf32, #tpu.memory_space<vmem>>, vector<8x128xf32>
      tpu.vector_store %arg9[%c0_40, %c0_41], %53 {strides = array<i32>} : memref<8x128xf32, #tpu.memory_space<vmem>>, vector<8x128xf32>,
    } else {
    }
    %c0 = arith.constant 0 : index
    %c0_1 = arith.constant 0 : index
    %c0_2 = arith.constant 0 : index
    %3 = vector.load %arg2[%c0, %c0_1, %c0_2] : memref<1x8x32xf32, #tpu.memory_space<vmem>>, vector<1x8x32xf32>
    %4 = vector.shape_cast %3 : vector<1x8x32xf32> to vector<8x32xf32>
    %c0_3 = arith.constant 0 : index
    %c0_4 = arith.constant 0 : index
    %c0_5 = arith.constant 0 : index
    %c0_6 = arith.constant 0 : index
    %5 = vector.load %arg3[%c0_3, %c0_4, %c0_5, %c0_6] : memref<1x3x32x8xf32, #tpu.memory_space<vmem>>, vector<1x1x32x8xf32>
    %6 = vector.shape_cast %5 : vector<1x1x32x8xf32> to vector<32x8xf32>
    %c0_7 = arith.constant 0 : index
    %c1 = arith.constant 1 : index
    %c0_8 = arith.constant 0 : index
    %c0_9 = arith.constant 0 : index
    %7 = vector.load %arg3[%c0_7, %c1, %c0_8, %c0_9] : memref<1x3x32x8xf32, #tpu.memory_space<vmem>>, vector<1x1x32x8xf32>
    %8 = vector.shape_cast %7 : vector<1x1x32x8xf32> to vector<32x8xf32>
    %c0_10 = arith.constant 0 : index
    %c2 = arith.constant 2 : index
    %c0_11 = arith.constant 0 : index
    %c0_12 = arith.constant 0 : index
    %9 = vector.load %arg3[%c0_10, %c2, %c0_11, %c0_12] : memref<1x3x32x8xf32, #tpu.memory_space<vmem>>, vector<1x1x32x8xf32>
    %10 = vector.shape_cast %9 : vector<1x1x32x8xf32> to vector<32x8xf32>
    %c0_13 = arith.constant 0 : index
    %c0_14 = arith.constant 0 : index
    %c0_15 = arith.constant 0 : index
    %11 = vector.load %arg4[%c0_13, %c0_14, %c0_15] : memref<1x8x128xf32, #tpu.memory_space<vmem>>, vector<1x8x128xf32>
    %12 = vector.shape_cast %11 : vector<1x8x128xf32> to vector<8x128xf32>
    %cst = arith.constant dense<0.000000e+00> : vector<8x8xf32>
    %13 = tpu.matmul %4, %6, %cst {dimension_numbers = #tpu.dot_dimension_numbers<[1], [0], [0], [1], [0, 0, 1, 1], [], []>} : vector<8x32xf32>, vector<32x8xf32>, vector<8x8xf32> -> vector<8x8xf32>
    %cst_16 = arith.constant 0.353553385 : f32
    %14 = vector.broadcast %cst_16 : f32 to vector<8x8xf32>
    %15 = arith.mulf %13, %14 : vector<8x8xf32>
    %cst_17 = arith.constant dense<0.000000e+00> : vector<8x8xf32>
    %16 = tpu.matmul %4, %8, %cst_17 {dimension_numbers = #tpu.dot_dimension_numbers<[1], [0], [0], [1], [0, 0, 1, 1], [], []>} : vector<8x32xf32>, vector<32x8xf32>, vector<8x8xf32> -> vector<8x8xf32>
    %cst_18 = arith.constant dense<0.000000e+00> : vector<8x8xf32>
    %17 = tpu.matmul %4, %10, %cst_18 {dimension_numbers = #tpu.dot_dimension_numbers<[1], [0], [0], [1], [0, 0, 1, 1], [], []>} : vector<8x32xf32>, vector<32x8xf32>, vector<8x8xf32> -> vector<8x8xf32>
    %18 = tpu.transpose %16, [1, 0] : vector<8x8xf32> -> vector<8x8xf32>
    %cst_19 = arith.constant dense<0.000000e+00> : vector<8x8xf32>
    %19 = tpu.matmul %15, %18, %cst_19 {dimension_numbers = #tpu.dot_dimension_numbers<[1], [0], [0], [1], [0, 0, 1, 1], [], []>} : vector<8x8xf32>, vector<8x8xf32>, vector<8x8xf32> -> vector<8x8xf32>
    %c0_20 = arith.constant 0 : index
    %c0_21 = arith.constant 0 : index
    %20 = vector.load %arg8[%c0_20, %c0_21] : memref<8x8xf32, #tpu.memory_space<vmem>>, vector<8x8xf32>
    %21 = arith.addf %19, %20 : vector<8x8xf32>
    %cst_22 = arith.constant dense<0xFF800000> : vector<8xf32>
    %22 = vector.multi_reduction <maximumf>, %21, %cst_22 [1] : vector<8x8xf32> to vector<8xf32>
    %23 = vector.shape_cast %22 : vector<8xf32> to vector<8x1xf32>
    %24 = vector.broadcast %23 : vector<8x1xf32> to vector<8x8xf32>
    %25 = arith.subf %21, %24 : vector<8x8xf32>
    %26 = math.exp %25 : vector<8x8xf32>
    %cst_23 = arith.constant dense<0.000000e+00> : vector<8xf32>
    %27 = vector.multi_reduction <add>, %26, %cst_23 [1] : vector<8x8xf32> to vector<8xf32>
    %28 = vector.shape_cast %27 : vector<8xf32> to vector<8x1xf32>
    %29 = tpu.reciprocal %28 {approx = true} : vector<8x1xf32> -> vector<8x1xf32>
    %30 = vector.broadcast %29 : vector<8x1xf32> to vector<8x8xf32>
    %31 = arith.mulf %26, %30 : vector<8x8xf32>
    %cst_24 = arith.constant dense<0.000000e+00> : vector<8x8xf32>
    %32 = tpu.matmul %31, %17, %cst_24 {dimension_numbers = #tpu.dot_dimension_numbers<[1], [0], [0], [1], [0, 0, 1, 1], [], []>} : vector<8x8xf32>, vector<8x8xf32>, vector<8x8xf32> -> vector<8x8xf32>
    %c0_25 = arith.constant 0 : index
    %c0_26 = arith.constant 0 : index
    %33 = vector.load %arg9[%c0_25, %c0_26] : memref<8x128xf32, #tpu.memory_space<vmem>>, vector<8x128xf32>
    %cst_27 = arith.constant dense<0.000000e+00> : vector<8x128xf32>
    %34 = tpu.matmul %32, %12, %cst_27 {dimension_numbers = #tpu.dot_dimension_numbers<[1], [0], [0], [1], [0, 0, 1, 1], [], []>} : vector<8x8xf32>, vector<8x128xf32>, vector<8x128xf32> -> vector<8x128xf32>
    %35 = arith.addf %33, %34 : vector<8x128xf32>
    %c0_28 = arith.constant 0 : index
    %c0_29 = arith.constant 0 : index
    %36 = vector.load %arg9[%c0_28, %c0_29] : memref<8x128xf32, #tpu.memory_space<vmem>>, vector<8x128xf32>
    tpu.vector_store %arg9[%c0_28, %c0_29], %35 {strides = array<i32>} : memref<8x128xf32, #tpu.memory_space<vmem>>, vector<8x128xf32>,
    %c3_i32 = arith.constant 3 : i32
    %37 = arith.cmpi eq, %arg1, %c3_i32 : i32
    %38 = arith.extui %37 : i1 to i32
    %c0_i32_30 = arith.constant 0 : i32
    %39 = arith.cmpi ne, %38, %c0_i32_30 : i32
    scf.if %39 {
      %c0_31 = arith.constant 0 : index
      %c0_32 = arith.constant 0 : index
      %40 = vector.load %arg9[%c0_31, %c0_32] : memref<8x128xf32, #tpu.memory_space<vmem>>, vector<8x128xf32>
      %c0_33 = arith.constant 0 : index
      %c0_34 = arith.constant 0 : index
      %41 = vector.load %arg5[%c0_33, %c0_34] : memref<1x128xf32, #tpu.memory_space<vmem>>, vector<1x128xf32>
      %42 = vector.broadcast %41 : vector<1x128xf32> to vector<8x128xf32>
      %43 = arith.addf %40, %42 : vector<8x128xf32>
      %c0_35 = arith.constant 0 : index
      %c0_36 = arith.constant 0 : index
      %c0_37 = arith.constant 0 : index
      %44 = vector.load %arg7[%c0_35, %c0_36, %c0_37] : memref<1x8x128xf32, #tpu.memory_space<vmem>>, vector<1x8x128xf32>
      %45 = vector.shape_cast %44 : vector<1x8x128xf32> to vector<8x128xf32>
      %46 = vector.shape_cast %43 : vector<8x128xf32> to vector<1x8x128xf32>
      tpu.vector_store %arg7[%c0_35, %c0_36, %c0_37], %46 {strides = array<i32>} : memref<1x8x128xf32, #tpu.memory_space<vmem>>, vector<1x8x128xf32>,
    } else {
    }
    return
  }
  func.func @transform_0(%arg0: i32, %arg1: i32) -> (i32, i32, i32) {
    %c0_i32 = arith.constant 0 : i32
    %c0_i32_0 = arith.constant 0 : i32
    %c0_i32_1 = arith.constant 0 : i32
    return %arg0, %c0_i32, %c0_i32_0 : i32, i32, i32
  }
  func.func @transform_1(%arg0: i32, %arg1: i32) -> (i32, i32, i32, i32) {
    %c0_i32 = arith.constant 0 : i32
    %c0_i32_0 = arith.constant 0 : i32
    %c0_i32_1 = arith.constant 0 : i32
    %c0_i32_2 = arith.constant 0 : i32
    return %arg1, %c0_i32, %c0_i32_0, %c0_i32_1 : i32, i32, i32, i32
  }
  func.func @transform_2(%arg0: i32, %arg1: i32) -> (i32, i32, i32) {
    %c0_i32 = arith.constant 0 : i32
    %c0_i32_0 = arith.constant 0 : i32
    %c0_i32_1 = arith.constant 0 : i32
    return %arg1, %c0_i32, %c0_i32_0 : i32, i32, i32
  }
  func.func @transform_3(%arg0: i32, %arg1: i32) -> (i32, i32) {
    %c0_i32 = arith.constant 0 : i32
    %c0_i32_0 = arith.constant 0 : i32
    %c0_i32_1 = arith.constant 0 : i32
    return %c0_i32, %c0_i32_0 : i32, i32
  }
  func.func @transform_4(%arg0: i32, %arg1: i32) -> (i32, i32, i32) {
    %c0_i32 = arith.constant 0 : i32
    %c0_i32_0 = arith.constant 0 : i32
    %c0_i32_1 = arith.constant 0 : i32
    return %arg0, %c0_i32, %c0_i32_0 : i32, i32, i32
  }
  func.func @transform_5(%arg0: i32, %arg1: i32) -> (i32, i32, i32) {
    %c0_i32 = arith.constant 0 : i32
    %c0_i32_0 = arith.constant 0 : i32
    %c0_i32_1 = arith.constant 0 : i32
    return %arg0, %c0_i32, %c0_i32_0 : i32, i32, i32
  }
}

</mosaic_0001>

<bundles_post_ra>
// kernel: tpu_custom_call.1
= control target key start
LH: loop header
LB: loop body
LE: loop exit
PB: predicated region body
PF: predicated region fallthrough
CT: control target
= control target key end

     0   :  { %10 = vsyncpa [#allocation5], 0  ;;  %s1013_s0 = inlined_call_operand.vmem [shape: f32[2,8,32], index: 0, kind: input, shape index: {}]   ;;  %s1014_s1 = inlined_call_operand.vmem [shape: f32[4,3,32,8], index: 1, kind: input, shape index: {}]   ;;  %s1015_s2 = inlined_call_operand.vmem [shape: f32[4,8,128], index: 2, kind: input, shape index: {}]   ;;  %s1016_s3 = inlined_call_operand.vmem [shape: f32[1,128], index: 3, kind: input, shape index: {}]   ;;  %s1017_s4 = inlined_call_operand.vmem [shape: f32[2,1,8], index: 4, kind: input, shape index: {}]   ;;  %s1018_s5 = inlined_call_operand.hbm [shape: f32[2,8,128], index: 5, kind: output, shape index: {}]  }
   0x1   :  { %12 = vsyncpa [#allocation5 + $0x1], 0  ;;  %s840_s18 = smov 0   ;;  %s842_s19 = smov 0  }
   0x2   :  { %s844_s20 = smov 0   ;;  %s846_s21 = smov 0  }
   0x3   :  { %s848_s22 = smov 0   ;;  %s850_s23 = smov 0  }
   0x4   :  { %s852_s24 = smov 0   ;;  %s854_s25 = smov 0  }
   0x5 LB: > { %1025 = sst [smem:[#allocation7_spill]] %s785_s20  ;;  %s601_s26 = sadd.s32 4294967295, %s805_s25   ;;  %s805_s25 = sphi %s854_s25, %s18_s25   ;;  %s801_s24 = sphi %s852_s24, %s1041_s24   ;;  %s797_s23 = sphi %s850_s23, %s1040_s23   ;;  %s793_s22 = sphi %s848_s22, %s1039_s22   ;;  %s789_s21 = sphi %s846_s21, %s1038_s21   ;;  %s785_s20 = sphi %s844_s20, %s1037_s20   ;;  %s781_s19 = sphi %s842_s19, %s1043_s19   ;;  %s777_s18 = sphi %s840_s18, %s1042_s18  }
   0x6   : > { %1026 = sst [smem:[#allocation8_spill]] %s797_s23  ;;  %s602_s27 = sadd.s32 4294967294, %s805_s25  }
   0x7   : > { %1027 = sst [smem:[#allocation9_spill]] %s801_s24  ;;  %s27_s28 = sadd.s32 1, %s797_s23 }
   0x8   : > { %p28_p0 = scmp.ge.s32.totalorder %s27_s28, 4  ;;  %s30_s29 = sadd.s32 1, %s801_s24 }
   0x9   : > { %p172_p1 = scmp.ne.s32.totalorder %s785_s20, %s781_s19  ;;  %p173_p2 = scmp.eq.s32.totalorder %s601_s26, 7 }
   0xa   : > { %s1045_s28 = smov (%p28_p0, %s27_s28), 0  ;;  %s1047_s29 = smov (!%p28_p0, %s30_s29), %s801_s24 }
   0xb   : > { %1028 = sst [smem:[#allocation10_spill]] %s1045_s28  ;;  %p889_p3 = por %p173_p2, %p172_p1 }
   0xc   : > { %p178_p4 = scmp.ne.s32.totalorder %s781_s19, %s777_s18  ;;  %p32_p5 = scmp.ge.s32.totalorder %s1047_s29, 2 }
   0xd   : > { %p179_p6 = scmp.eq.s32.totalorder %s602_s27, 7  ;;  %p605_p7 = scmp.ge.s32.totalorder %s805_s25, 1 }
   0xe   : > { %p228_p8 = scmp.lt.s32.totalorder %s805_s25, 9  ;;  %s1049_s29 = smov (%p32_p5, %s1047_s29), 0 }
   0xf   : > { %1030 = sst [smem:[#allocation11_spill]] %s1049_s29  ;;  %p899_p9 = por %p179_p6, %p178_p4 }
  0x10   : > { %p229_p10 = pnand %p605_p7, %p228_p8  ;;  %s159_s7 = ssub.s32 %s801_s24, %s1049_s29 }
  0x11   : > { %s1031_s6 = scalar_select %p899_p9, 1, 0 }
  0x12   : > { %s162_s8 = sadd.s32 1, %s785_s20  ;;  %p160_p11 = scmp.eq.s32.totalorder %s159_s7, 0 }
  0x13   : > { %1032 = sst [smem:[#allocation12_spill]] %s1031_s6  ;;  %232 = sbr.rel (%p229_p10) target bundleno = 855 (0x357), region = 40 }
  0x14   : > { %s907_s9 = scalar_select %p160_p11, %s785_s20, %s162_s8  }
  0x15   : > { %s1021_s10 = sand.u32 (!%p229_p10), 1, %s781_s19   ;;  %p267_p12 = scmp.lt.s32.totalorder (!%p229_p10), %s793_s22, 1 }
  0x16   : > { %1033 = sst [smem:[#allocation13_spill]] %s907_s9  ;;  %s913_s11 = sshll.u32 (!%p229_p10), %s1021_s10, 3 }
  0x17   : > { %p271_p13 = scmp.lt.s32.totalorder (!%p229_p10), %s789_s21, 3  ;;  %s266_s6 = scalar_lea.vmem (!%p229_p10), [#allocation4], %s913_s11 }
  0x18   : > { %s268_s12 = scalar_select %p267_p12, %s793_s22, 1 }
  0x19   : > { %s272_s13 = scalar_select %p271_p13, %s789_s21, 3 }
  0x1a   : > { %s607_s14 = sshll.u32 %s268_s12, 3  ;;  %s282_s17 = scalar_lea.vmem %s1017_s4, %s268_s12 }
  0x1b   : > { %s924_s7 = scalar_lea.vmem %s1013_s0, %s607_s14  ;;  %s631_s8 = smul.u32 96, %s272_s13 }
  0x1c   : > { %s609_s29 = sshll.u32 %s272_s13, 3  ;;  %p610_p0 = scmp.ne.s32.totalorder %s789_s21, 0 }
  0x1d   : > { %s929_s10 = scalar_lea.vmem %s1014_s1, %s631_s8  ;;  %s934_s20 = scalar_lea.vmem %s1015_s2, %s609_s29 }
  0x1e   : > { %286 = sbr.rel (%p610_p0) target bundleno = 44 (0x2c), region = 44 }
  0x23   : > { %v287_v0 = vlaneseq  ;;  %v292_v1 = vld [vmem:[%s282_s17] sm:$0x1]  ;;  %v807_v4 = vmov 0   ;;  %v808_v6 = vmov 0.0   ;;  %vm299_vm3 = vcmask 64512  }
  0x24   : > { %vm293_vm0 = vcmp.gt.f32.partialorder %v292_v1, 0.5  ;;  %301 = vst [vmem:[#allocation3] sm:$0xff] %v808_v6  ;;  %v809_v8 = vmov -inf  }
  0x25   : > { %v288_v2 = vshrl.u32 %v287_v0, 7  ;;  %v290_v3 = vand.u32 127, %v287_v0  ;;  %v294_v5 = vsel %vm293_vm0, 1, %v807_v4 }
  0x26   : > { %v295_v7 = vperm.slane %v294_v5, 0 }
  0x27   : > { %vm291_vm1 = vcmp.le.s32.totalorder %v290_v3, %v288_v2 }
  0x28   : > { %vm296_vm2 = vcmp.eq.s32.totalorder %v295_v7, 1 }
  0x29   : > { %vm297_vm4 = vmand %vm291_vm1, %vm296_vm2 }
  0x2a   : > { %v298_v9 = vsel %vm297_vm4, 0.0, %v809_v8 }
  0x2b   : > { %300 = vst.msk [vmem:[#allocation2] sm:$0xff] %vm299_vm3, %v298_v9 }
  0x2c PF: > { %v614_v10 = vld [vmem:[%s929_s10 + $0x38] sm:$0xff]  ;;  %v613_v12 = vld [vmem:[%s929_s10 + $0x30] sm:$0xff]  ;;  %v612_v14 = vld [vmem:[%s929_s10 + $0x28] sm:$0xff]  ;;  %vm318_vm5 = vcmask 261120   ;;  %vm384_vm6 = vcmask 64512   ;;  %p626_p1 = scmp.ne.s32.totalorder %s789_s21, 3 }
  0x2d   : > { %v306_v11 = vld [vmem:[%s929_s10 + $0x18] sm:$0xff]  ;;  %355 = vmatpush.msra.mxu1 %v614_v10  ;;  %v305_v13 = vld [vmem:[%s929_s10 + $0x10] sm:$0xff]  ;;  %v304_v15 = vld [vmem:[%s929_s10 + $0x8] sm:$0xff] }
  0x2e   : > { %334 = vmatpush.msra.mxu0 %v306_v11  ;;  %v611_v16 = vld [vmem:[%s929_s10 + $0x20] sm:$0xff]  ;;  %v618_v22 = vld [vmem:[%s929_s10 + $0x58] sm:$0xff]  ;;  %v617_v23 = vld [vmem:[%s929_s10 + $0x50] sm:$0xff] }
  0x2f   : > { %356 = vmatpush.msra.mxu1 %v613_v12  ;;  %v303_v17 = vld [vmem:[%s929_s10] sm:$0xff]  ;;  %375 = vmatpush.msra.mxu2 %v618_v22  ;;  %v616_v24 = vld [vmem:[%s929_s10 + $0x48] sm:$0xff] }
  0x30   : > { %335 = vmatpush.msra.mxu0 %v305_v13  ;;  %v302_v18 = vld [vmem:[%s924_s7] sm:$0xff]  ;;  %v445_v41 = vld [vmem:[#allocation3] sm:$0xff] }
  0x31   : > { %357 = vmatpush.msra.mxu1 %v612_v14  ;;  %376 = vmatpush.msra.mxu2 %v617_v23  ;;  %v615_v25 = vld [vmem:[%s929_s10 + $0x40] sm:$0xff] }
  0x32   : > { %336 = vmatpush.msra.mxu0 %v304_v15  ;;  %v383_v26 = vld [vmem:[#allocation2] sm:$0xff] }
  0x33   : > { %358 = vmatpush.msra.mxu1 %v611_v16  ;;  %377 = vmatpush.msra.mxu2 %v616_v24  ;;  %v317_v36 = vld [vmem:[%s934_s20] sm:$0xff] }
  0x34   : > { %337 = vmatpush.msra.mxu0 %v303_v17  ;;  %620 = vmatmul.msk.f32.vlgmr.msra.gmra.mxu1 %vm318_vm5, %v302_v18 }
  0x35   : > { %619 = vmatmul.msk.f32.vlgmr.msra.gmra.mxu0 %vm318_vm5, %v302_v18  ;;  %378 = vmatpush.msra.mxu2 %v615_v25 }
  0x36   : > { %621 = vmatmul.msk.f32.vlgmr.msra.gmra.mxu2 %vm318_vm5, %v302_v18  ;;  %464 = vmatpush.msrb.mxu0 %v317_v36 }
  0xb1   : > { %v360_v19 = vpop.f32.mrf.mxu1 }
  0xb2   : > { %v339_v20 = vpop.f32.mrf.mxu0  ;;  %622 = vmatpush.xpose.msk.msra.mxu3 %vm384_vm6, %v360_v19 }
  0xb3   : > { %v342_v21 = vmul.f32 0.35355338, %v339_v20 }
  0xb5   : > { %623 = vmatmul.msk.f32.vlgmr.msra.gmra.mxu3 %vm384_vm6, %v342_v21 }
  0xb9   : > { %v380_v35 = vpop.f32.mrf.mxu2 }
  0xba   : > { %440 = vmatpush.msrb.mxu3 %v380_v35 }
 0x138   : > { %v408_v27 = vpop.f32.mrf.mxu3 }
 0x139   : > { %v409_v28 = vadd.f32 %v408_v27, %v383_v26 }
 0x13b   : > { %v411_v29 = vsel %vm384_vm6, %v409_v28, -inf }
 0x13c   : > { %412 = vmax.xlane.f32.xlu0 %v411_v29 }
 0x1af   : > { %v413_v30 = vpop.xlane.xlu0 %412 }
 0x1b0   : > { %v414_v31 = vsub.f32 %v409_v28, %v413_v30 }
 0x1b2   : > { %v415_v32 = vmul.f32 1.442695, %v414_v31 }
 0x1b4   : > { %706 = vpow2.f32 %v415_v32 }
 0x1ba   : > { %v707_v33 = vpop.eup %706 }
 0x1bb   : > { %v417_v34 = vsel %vm384_vm6, %v707_v33, 0.0 }
 0x1bc   : > { %418 = vadd.xlane.f32.xlu0 %v417_v34 }
 0x22f   : > { %v419_v37 = vpop.xlane.xlu0 %418 }
 0x230   : > { %708 = vrcp.f32 %v419_v37 }
 0x236   : > { %v709_v38 = vpop.eup %708 }
 0x237   : > { %v421_v39 = vmul.f32 %v709_v38, %v707_v33 }
 0x239   : > { %624 = vmatmul.msk.f32.vlgmr.msrb.gmra.mxu3 %vm384_vm6, %v421_v39 }
 0x2bc   : > { %v442_v40 = vpop.f32.mrf.mxu3 }
 0x2bd   : > { %625 = vmatmul.msk.f32.vlgmr.msrb.gmra.mxu0 %vm384_vm6, %v442_v40 }
 0x339   : > { %474 = sbr.rel (%p626_p1) target bundleno = 840 (0x348), region = 48 }
 0x33a   : > { %v466_v42 = vpop.f32.mrf.mxu0 }
 0x33b   : > { %v469_v43 = vadd.f32 %v466_v42, %v445_v41 }
 0x33d   : > { %470 = vst [vmem:[#allocation3] sm:$0xff] %v469_v43 }
 0x33e   : > { %v710_v45 = vld [vmem:[%s1016_s3] ss:$0 sm:$0xff] }
 0x344   : > { %v475_v44 = vld [vmem:[#allocation3] sm:$0xff] }
 0x345   : > { %v480_v46 = vadd.f32 %v710_v45, %v475_v44 }
 0x347   : > { %481 = vst [vmem:[%s266_s6] sm:$0xff] %v480_v46 }
 0x348 PF: > { %s628_s24 = sshll.u32 %s793_s22, 3  ;;  %s495_s9 = sshll.u32 %s266_s6, 4  ;;  %s496_s9 = int_to_ptr.vmem [resolvable:$true] %s495_s9 }
 0x349   : > { %s493_s21 = scalar_lea.hbm %s1018_s5, %s628_s24  ;;  %s1034_s12 = sand.u32 1, %s781_s19  }
 0x34a   : > { %s497_s10 = sshll.u32 %s493_s21, 4  ;;  %s483_s13 = scalar_lea.sflag [#allocation5], %s1034_s12  ;;  %s498_s10 = int_to_ptr.hbm [resolvable:$true] %s497_s10 }
 0x34b   : > { %s725_s14 = sshra.s32 %s498_s10, 4  ;;  %s731_s17 = scalar_lea.hbm %s1018_s5, 16  ;;  %s726_s14 = int_to_ptr.hbm [resolvable:$true] %s725_s14 }
 0x34c   : > { %s727_s15 = scalar_lea.hbm %s726_s14, 8  ;;  %p732_p6 = scmp.lt.s32.totalorder %s726_s14, %s1018_s5 }
 0x34d   : > { %p728_p2 = scmp.ne.s32.totalorder %s726_s14, %s727_s15  ;;  %p733_p7 = scmp.lt.s32.totalorder %s731_s17, %s727_s15 }
 0x34f   : > { %p729_p4 = pnand %p728_p2, %p889_p3  ;;  %p734_p8 = por %p733_p7, %p732_p6 }
 0x351   : > { %p730_p5 = pneg %p729_p4 }
 0x353   : > { %p735_p10 = pnand %p734_p8, %p730_p5 }
 0x355   : > { %738 = shalt.err (!%p735_p10)
}
 0x356   : > { %632 = dma.vmem_to_hbm [thread:$0]  (%p889_p3), %s496_s9, 128, %s498_s10, %s483_s13  }
 0x357 PF: > { %p638_p11 = scmp.ge.s32.totalorder %s805_s25, 2  ;;  %s509_s11 = sand.u32 1, %s777_s18  }
 0x358   : > { %s510_s7 = scalar_lea.sflag [#allocation5], %s509_s11 }
 0x359   : > { %p635_p12 = pnand %p638_p11, %p899_p9 }
 0x35b   : > { %p636_p13 = pneg %p635_p12 }
 0x35d   : > { %772 = dma.done.wait (%p636_p13), %s510_s7, 128  }
 0x35e   : > { %774 = vsyncadd (%p636_p13), %s510_s7, 4294967168  ;;  %s18_s25 = sadd.s32 1, %s805_s25   ;;  %s1036_s8 = sld [smem:[#allocation7_spill]] }
 0x35f   : > { %p15_p0 = scmp.ge.s32.totalorder %s18_s25, 10   ;;  %s1037_s20 = sld [smem:[#allocation13_spill]] }
 0x360   : > { %s1038_s21 = sld [smem:[#allocation8_spill]]  ;;  %s1042_s18 = smov %s781_s19 }
 0x361   : > { %s1039_s22 = sld [smem:[#allocation9_spill]]  ;;  %17 = sbr.rel (!%p15_p0) target bundleno = 5 (0x5), region = 94 }
 0x362   : > { %s1040_s23 = sld [smem:[#allocation10_spill]] }
 0x363   : > { %s1041_s24 = sld [smem:[#allocation11_spill]] }
 0x364   : > { %s1043_s19 = smov %s1036_s8 }
 0x366   :  { %516 = vsyncpa [#allocation5], 1 }
 0x367   :  { %518 = vsyncpa [#allocation5 + $0x1], 1 }

</bundles_post_ra>
